<compile_context>
chip_gen: v6e
topology: v6e:2x2x1
jax: 0.10.0
libtpu: 0.0.40
codegen_flags: <defaults>
</compile_context>

<pallas_src>
import functools

import jax
import jax.numpy as jnp
from jax.experimental import pallas as pl
from jax.experimental.pallas import tpu as pltpu

LANE = 128      # lane width (last dim tiling)
SUBLANE = 16    # bf16 sublane packing for the batch (second-to-last) dim
VMEM_LIMIT_BYTES = 48 * 1024 * 1024   # safe on v5e/v6e (128 MiB) and v7x (64 MiB/TC)


def _round_up(v, m):
    return (v + m - 1) // m * m


# ----------------------------------------------------------------------------- kernel
def _classifier_kernel(n_layers, x_ref, *refs):
    """Fused MLP forward for one batch tile.

    refs = (w0, b0, w1, b1, ..., w{L-1}, b{L-1}, out_ref)
    Weights are bf16 [in, out]; biases are f32 [1, out]; activations bf16 in,
    f32 accumulation, ReLU on all layers except the last, bf16 output.
    """
    out_ref = refs[-1]
    params = refs[:-1]
    assert len(params) == 2 * n_layers

    h = x_ref[...]  # bf16 [TB, D0]
    for i in range(n_layers):
        w = params[2 * i][...]        # bf16 [in, out]
        b = params[2 * i + 1][...]    # f32  [1, out]
        acc = jnp.dot(h, w, preferred_element_type=jnp.float32) + b
        if i < n_layers - 1:
            h = jnp.maximum(acc, 0.0).astype(jnp.bfloat16)   # ReLU + single cast point
        else:
            out_ref[...] = acc.astype(out_ref.dtype)          # bf16 lane-dense store


# ----------------------------------------------------------------------------- params
def prepare_classifier_params(weights, biases):
    """One-time parameter preparation (hoisted out of the hot forward path).

    Pads every feature dim to a multiple of 128 with zeros and casts weights to bf16.
    weights[i]: [in_i, out_i] f32; biases[i]: [1, out_i] (or [out_i]) f32.
    """
    in_dims = [w.shape[0] for w in weights]
    out_dims = [w.shape[1] for w in weights]
    in_pad = [_round_up(d, LANE) for d in in_dims]
    out_pad = [_round_up(d, LANE) for d in out_dims]

    flat = []
    for i, (w, b) in enumerate(zip(weights, biases)):
        wp = jnp.zeros((in_pad[i], out_pad[i]), jnp.bfloat16)
        wp = wp.at[: in_dims[i], : out_dims[i]].set(w.astype(jnp.bfloat16))
        bp = jnp.zeros((1, out_pad[i]), jnp.float32)
        bp = bp.at[:, : out_dims[i]].set(jnp.reshape(b, (1, -1)).astype(jnp.float32))
        flat.extend([wp, bp])

    return {
        "flat_params": tuple(flat),
        "n_layers": len(weights),
        "d_in": in_dims[0],
        "d_in_pad": in_pad[0],
        "d_out": out_dims[-1],
        "d_out_pad": out_pad[-1],
    }


# ----------------------------------------------------------------------------- wrapper
def classifier_forward(x, prepared, *, tb=1024):
    """x: [B, input_dim] (f32 or pre-padded bf16 [B_pad, d_in_pad]).

    Returns bf16 logits [B, output_dim].  Use `prepare_classifier_params` once and
    reuse the result across calls.  For very large B on v7x, keep tb such that
    B_pad // TB >= 2 so both TensorCores get batch tiles.
    """
    B, d_in = x.shape
    n_layers = prepared["n_layers"]
    d0 = prepared["d_in_pad"]
    out_p = prepared["d_out_pad"]
    out_dim = prepared["d_out"]
    flat_params = prepared["flat_params"]

    # Batch tile: multiple of 16 (bf16 sublanes), big enough to amortize grid overhead.
    TB = _round_up(max(SUBLANE, min(tb, _round_up(B, SUBLANE))), SUBLANE)
    B_pad = _round_up(B, TB)

    # Fast path: caller already supplies a padded bf16 slab -> no extra HBM pass.
    if x.dtype == jnp.bfloat16 and d_in == d0 and B == B_pad:
        x_p = x
    else:
        # TODO(synk): with caller cooperation (or allow_input_fusion) this pad+cast
        # pass over x could be fused into the pallas_call input DMA entirely.
        x_p = jnp.zeros((B_pad, d0), jnp.bfloat16)
        x_p = x_p.at[:B, :d_in].set(x.astype(jnp.bfloat16))

    in_specs = [pl.BlockSpec((TB, d0), lambda i: (i, 0))]
    for p in flat_params:
        # Constant block index -> weights/biases stay VMEM-resident across grid steps.
        in_specs.append(pl.BlockSpec(p.shape, lambda i: (0, 0)))
    out_specs = pl.BlockSpec((TB, out_p), lambda i: (i, 0))

    flops = 2 * B_pad * sum(
        flat_params[2 * i].shape[0] * flat_params[2 * i].shape[1] for i in range(n_layers)
    )
    bytes_accessed = (
        x_p.size * 2
        + sum(int(p.size) * p.dtype.itemsize for p in flat_params)
        + B_pad * out_p * 2
    )

    kernel = functools.partial(_classifier_kernel, n_layers)

    out_full = pl.pallas_call(
        kernel,
        out_shape=jax.ShapeDtypeStruct((B_pad, out_p), jnp.bfloat16),
        grid=(B_pad // TB,),
        in_specs=in_specs,
        out_specs=out_specs,
        compiler_params=pltpu.CompilerParams(
            dimension_semantics=("parallel",),        # shards batch tiles across v7x TCs
            vmem_limit_bytes=VMEM_LIMIT_BYTES,
        ),
        cost_estimate=pl.CostEstimate(
            flops=flops, transcendentals=0, bytes_accessed=bytes_accessed
        ),
    )(x_p, *flat_params)

    # Padded columns (out_dim..127) are exactly zero; slice them off for the caller.
    return out_full[:B, :out_dim]


# ----------------------------------------------------------------------------- init / ref
def init_classifier_params(key, input_dim, output_dim, hidden_layers, hidden_dim):
    """Mirror nn.Linear's U(-1/sqrt(fan_in), 1/sqrt(fan_in)) init.

    Layer structure (matches Classifier.__init__):
      BasicBlock(input_dim, hidden_dim)                  -> Linear + ReLU
      hidden_layers x BasicBlock(hidden_dim, hidden_dim) -> Linear + ReLU
      Linear(hidden_dim, output_dim)                     -> Linear (no ReLU)
    """
    dims = [input_dim] + [hidden_dim] * (hidden_layers + 1) + [output_dim]
    weights, biases = [], []
    for i in range(len(dims) - 1):
        fan_in, fan_out = dims[i], dims[i + 1]
        key, kw, kb = jax.random.split(key, 3)
        bound = 1.0 / jnp.sqrt(jnp.float32(fan_in))
        w = jax.random.uniform(kw, (fan_in, fan_out), jnp.float32, -bound, bound)
        b = jax.random.uniform(kb, (1, fan_out), jnp.float32, -bound, bound)
        weights.append(w)
        biases.append(b)
    return weights, biases


def reference_forward(x, weights, biases):
    """Pure-JAX reference with the same numerics (bf16 operands, f32 accumulation)."""
    h = x.astype(jnp.float32)
    for i, (w, b) in enumerate(zip(weights, biases)):
        h = jnp.dot(
            h.astype(jnp.bfloat16),
            w.astype(jnp.bfloat16),
            preferred_element_type=jnp.float32,
        ) + b
        if i < len(weights) - 1:
            h = jnp.maximum(h, 0.0)
    return h


# ----------------------------------------------------------------------------- main
if __name__ == "__main__":
    # Shapes implied by the module: input_dim = 39 * 7 = 273, hidden_dim = 256,
    # output_dim = 41, Classifier default hidden_layers = 1. Small batch for the demo.
    concat_nframes = 7
    input_dim = 39 * concat_nframes   # 273
    hidden_dim = 256
    hidden_layers = 1
    output_dim = 41
    batch = 8

    key = jax.random.PRNGKey(0)
    key, kx = jax.random.split(key)
    x = jax.random.normal(kx, (batch, input_dim), jnp.float32)

    weights, biases = init_classifier_params(
        key, input_dim, output_dim, hidden_layers, hidden_dim
    )
    prepared = prepare_classifier_params(weights, biases)   # one-time, out of hot path

    out = classifier_forward(x, prepared)
    out = jax.block_until_ready(out)

    ref = reference_forward(x, weights, biases)
    assert out.shape == (batch, output_dim), out.shape
    # Kernel emits bf16 logits (f32 accumulation, final bf16 cast) -> ~0.4% rel tol.
    assert jnp.allclose(out.astype(jnp.float32), ref, atol=2e-2, rtol=2e-2), (
        float(jnp.max(jnp.abs(out.astype(jnp.float32) - ref)))
    )
    print("KERNEL_OK")
</pallas_src>

<mosaic_0001>
module attributes {stable_mosaic.version = 11 : i64} {
  func.func @_classifier_kernel(%arg0: i32, %arg1: memref<16x384xbf16, #tpu.memory_space<vmem>>, %arg2: memref<384x256xbf16, #tpu.memory_space<vmem>>, %arg3: memref<1x256xf32, #tpu.memory_space<vmem>>, %arg4: memref<256x256xbf16, #tpu.memory_space<vmem>>, %arg5: memref<1x256xf32, #tpu.memory_space<vmem>>, %arg6: memref<256x128xbf16, #tpu.memory_space<vmem>>, %arg7: memref<1x128xf32, #tpu.memory_space<vmem>>, %arg8: memref<16x128xbf16, #tpu.memory_space<vmem>>) attributes {dimension_semantics = [#tpu.dimension_semantics<parallel>], iteration_bounds = array<i64: 1>, scalar_prefetch = 0 : i64, scratch_operands = 0 : i64, tpu.core_type = #tpu.core_type<tc>, window_params = [{transform_indices = @transform_0, window_bounds = array<i64: 16, 384>}, {pipeline_mode = #tpu.pipeline_mode<synchronous>, transform_indices = @transform_1, window_bounds = array<i64: 384, 256>}, {pipeline_mode = #tpu.pipeline_mode<synchronous>, transform_indices = @transform_2, window_bounds = array<i64: 1, 256>}, {pipeline_mode = #tpu.pipeline_mode<synchronous>, transform_indices = @transform_3, window_bounds = array<i64: 256, 256>}, {pipeline_mode = #tpu.pipeline_mode<synchronous>, transform_indices = @transform_4, window_bounds = array<i64: 1, 256>}, {pipeline_mode = #tpu.pipeline_mode<synchronous>, transform_indices = @transform_5, window_bounds = array<i64: 256, 128>}, {pipeline_mode = #tpu.pipeline_mode<synchronous>, transform_indices = @transform_6, window_bounds = array<i64: 1, 128>}, {transform_indices = @transform_7, window_bounds = array<i64: 16, 128>}]} {
    %c0 = arith.constant 0 : index
    %c0_0 = arith.constant 0 : index
    %0 = vector.load %arg1[%c0, %c0_0] : memref<16x384xbf16, #tpu.memory_space<vmem>>, vector<16x384xbf16>
    %c0_1 = arith.constant 0 : index
    %c0_2 = arith.constant 0 : index
    %1 = vector.load %arg2[%c0_1, %c0_2] : memref<384x256xbf16, #tpu.memory_space<vmem>>, vector<384x256xbf16>
    %c0_3 = arith.constant 0 : index
    %c0_4 = arith.constant 0 : index
    %2 = vector.load %arg3[%c0_3, %c0_4] : memref<1x256xf32, #tpu.memory_space<vmem>>, vector<1x256xf32>
    %cst = arith.constant dense<0.000000e+00> : vector<16x256xf32>
    %3 = tpu.matmul %0, %1, %cst {dimension_numbers = #tpu.dot_dimension_numbers<[1], [0], [0], [1], [0, 0, 1, 1], [], []>} : vector<16x384xbf16>, vector<384x256xbf16>, vector<16x256xf32> -> vector<16x256xf32>
    %4 = vector.broadcast %2 : vector<1x256xf32> to vector<16x256xf32>
    %5 = arith.addf %3, %4 : vector<16x256xf32>
    %cst_5 = arith.constant 0.000000e+00 : f32
    %6 = vector.broadcast %cst_5 : f32 to vector<16x256xf32>
    %7 = arith.maximumf %5, %6 : vector<16x256xf32>
    %8 = arith.truncf %7 : vector<16x256xf32> to vector<16x256xbf16>
    %c0_6 = arith.constant 0 : index
    %c0_7 = arith.constant 0 : index
    %9 = vector.load %arg4[%c0_6, %c0_7] : memref<256x256xbf16, #tpu.memory_space<vmem>>, vector<256x256xbf16>
    %c0_8 = arith.constant 0 : index
    %c0_9 = arith.constant 0 : index
    %10 = vector.load %arg5[%c0_8, %c0_9] : memref<1x256xf32, #tpu.memory_space<vmem>>, vector<1x256xf32>
    %cst_10 = arith.constant dense<0.000000e+00> : vector<16x256xf32>
    %11 = tpu.matmul %8, %9, %cst_10 {dimension_numbers = #tpu.dot_dimension_numbers<[1], [0], [0], [1], [0, 0, 1, 1], [], []>} : vector<16x256xbf16>, vector<256x256xbf16>, vector<16x256xf32> -> vector<16x256xf32>
    %12 = vector.broadcast %10 : vector<1x256xf32> to vector<16x256xf32>
    %13 = arith.addf %11, %12 : vector<16x256xf32>
    %cst_11 = arith.constant 0.000000e+00 : f32
    %14 = vector.broadcast %cst_11 : f32 to vector<16x256xf32>
    %15 = arith.maximumf %13, %14 : vector<16x256xf32>
    %16 = arith.truncf %15 : vector<16x256xf32> to vector<16x256xbf16>
    %c0_12 = arith.constant 0 : index
    %c0_13 = arith.constant 0 : index
    %17 = vector.load %arg6[%c0_12, %c0_13] : memref<256x128xbf16, #tpu.memory_space<vmem>>, vector<256x128xbf16>
    %c0_14 = arith.constant 0 : index
    %c0_15 = arith.constant 0 : index
    %18 = vector.load %arg7[%c0_14, %c0_15] : memref<1x128xf32, #tpu.memory_space<vmem>>, vector<1x128xf32>
    %cst_16 = arith.constant dense<0.000000e+00> : vector<16x128xf32>
    %19 = tpu.matmul %16, %17, %cst_16 {dimension_numbers = #tpu.dot_dimension_numbers<[1], [0], [0], [1], [0, 0, 1, 1], [], []>} : vector<16x256xbf16>, vector<256x128xbf16>, vector<16x128xf32> -> vector<16x128xf32>
    %20 = vector.broadcast %18 : vector<1x128xf32> to vector<16x128xf32>
    %21 = arith.addf %19, %20 : vector<16x128xf32>
    %22 = arith.truncf %21 : vector<16x128xf32> to vector<16x128xbf16>
    %c0_17 = arith.constant 0 : index
    %c0_18 = arith.constant 0 : index
    %23 = vector.load %arg8[%c0_17, %c0_18] : memref<16x128xbf16, #tpu.memory_space<vmem>>, vector<16x128xbf16>
    tpu.vector_store %arg8[%c0_17, %c0_18], %22 {strides = array<i32>} : memref<16x128xbf16, #tpu.memory_space<vmem>>, vector<16x128xbf16>,
    return
  }
  func.func @transform_0(%arg0: i32) -> (i32, i32) {
    %c0_i32 = arith.constant 0 : i32
    %c0_i32_0 = arith.constant 0 : i32
    return %arg0, %c0_i32 : i32, i32
  }
  func.func @transform_1(%arg0: i32) -> (i32, i32) {
    %c0_i32 = arith.constant 0 : i32
    %c0_i32_0 = arith.constant 0 : i32
    %c0_i32_1 = arith.constant 0 : i32
    return %c0_i32, %c0_i32_0 : i32, i32
  }
  func.func @transform_2(%arg0: i32) -> (i32, i32) {
    %c0_i32 = arith.constant 0 : i32
    %c0_i32_0 = arith.constant 0 : i32
    %c0_i32_1 = arith.constant 0 : i32
    return %c0_i32, %c0_i32_0 : i32, i32
  }
  func.func @transform_3(%arg0: i32) -> (i32, i32) {
    %c0_i32 = arith.constant 0 : i32
    %c0_i32_0 = arith.constant 0 : i32
    %c0_i32_1 = arith.constant 0 : i32
    return %c0_i32, %c0_i32_0 : i32, i32
  }
  func.func @transform_4(%arg0: i32) -> (i32, i32) {
    %c0_i32 = arith.constant 0 : i32
    %c0_i32_0 = arith.constant 0 : i32
    %c0_i32_1 = arith.constant 0 : i32
    return %c0_i32, %c0_i32_0 : i32, i32
  }
  func.func @transform_5(%arg0: i32) -> (i32, i32) {
    %c0_i32 = arith.constant 0 : i32
    %c0_i32_0 = arith.constant 0 : i32
    %c0_i32_1 = arith.constant 0 : i32
    return %c0_i32, %c0_i32_0 : i32, i32
  }
  func.func @transform_6(%arg0: i32) -> (i32, i32) {
    %c0_i32 = arith.constant 0 : i32
    %c0_i32_0 = arith.constant 0 : i32
    %c0_i32_1 = arith.constant 0 : i32
    return %c0_i32, %c0_i32_0 : i32, i32
  }
  func.func @transform_7(%arg0: i32) -> (i32, i32) {
    %c0_i32 = arith.constant 0 : i32
    %c0_i32_0 = arith.constant 0 : i32
    return %arg0, %c0_i32 : i32, i32
  }
}

</mosaic_0001>

<bundles_post_ra>
// kernel: tpu_custom_call.1
= control target key start
LH: loop header
LB: loop body
LE: loop exit
PB: predicated region body
PF: predicated region fallthrough
CT: control target
= control target key end

     0   :  { %12 = vsyncpa [#allocation3], 0  ;;  %s1432_s0 = inlined_call_operand.hbm [shape: bf16[16,384], index: 0, kind: input, shape index: {}]   ;;  %s1433_s1 = inlined_call_operand.hbm [shape: bf16[384,256], index: 1, kind: input, shape index: {}]   ;;  %s1434_s2 = inlined_call_operand.vmem [shape: f32[1,256], index: 2, kind: input, shape index: {}]   ;;  %s1435_s3 = inlined_call_operand.hbm [shape: bf16[256,256], index: 3, kind: input, shape index: {}]   ;;  %s1436_s4 = inlined_call_operand.vmem [shape: f32[1,256], index: 4, kind: input, shape index: {}]   ;;  %s1437_s5 = inlined_call_operand.hbm [shape: bf16[256,128], index: 5, kind: input, shape index: {}]   ;;  %s1438_s6 = inlined_call_operand.vmem [shape: f32[1,128], index: 6, kind: input, shape index: {}]   ;;  %s1439_s7 = inlined_call_operand.hbm [shape: bf16[16,128], index: 7, kind: output, shape index: {}]  }
   0x1   :  { %13 = vsyncpa [#allocation6], 0 }
   0x2   :  { %14 = vsyncpa [#allocation9], 0 }
   0x3   :  { %15 = vsyncpa [#allocation4], 0  ;;  %s1344_s24 = smov [#allocation5]  }
   0x4   :  { %s33_s25 = sshll.u32 %s1344_s24, 4  ;;  %s34_s25 = int_to_ptr.vmem [resolvable:$true] %s33_s25 }
   0x5   :  { %s1244_s26 = scalar_lea.vmem %s34_s25, 6144  ;;  %p1249_p1 = scmp.lt.s32.totalorder %s34_s25, %s34_s25 }
   0x6   :  { %p1245_p0 = scmp.ne.s32.totalorder %s34_s25, %s1244_s26  ;;  %p1250_p2 = scmp.lt.s32.totalorder %s1244_s26, %s1244_s26 }
   0x8   :  { %p1251_p3 = por %p1250_p2, %p1249_p1 }
   0xa   :  { %p1252_p4 = pnand %p1251_p3, %p1245_p0 }
   0xc   :  { %1255 = shalt.err (!%p1252_p4)
}
   0xd   :  { %s1345_s27 = smov 128   ;;  %s1346_s28 = smov 8  }
   0xe   :  { %39 = dma.hbm_to_vmem [thread:$0]  %s1433_s1, 6144, %s34_s25, [#allocation6], %s1345_s27, %s1345_s27, %s1346_s28  }
   0xf   :  { %s1347_s8 = smov [#allocation2]  }
  0x10   :  { %s21_s9 = sshll.u32 %s1347_s8, 4  ;;  %s22_s9 = int_to_ptr.vmem [resolvable:$true] %s21_s9 }
  0x11   :  { %s1264_s10 = scalar_lea.vmem %s22_s9, 384  ;;  %p1269_p6 = scmp.lt.s32.totalorder %s22_s9, %s22_s9 }
  0x12   :  { %p1265_p5 = scmp.ne.s32.totalorder %s22_s9, %s1264_s10  ;;  %p1270_p7 = scmp.lt.s32.totalorder %s1264_s10, %s1264_s10 }
  0x14   :  { %p1271_p8 = por %p1270_p7, %p1269_p6 }
  0x16   :  { %p1272_p9 = pnand %p1271_p8, %p1265_p5 }
  0x18   :  { %1275 = shalt.err (!%p1272_p9)
}
  0x19   :  { %s1348_s11 = smov 192   ;;  %s1349_s12 = smov 12  }
  0x1a   :  { %27 = dma.hbm_to_vmem [thread:$0]  %s1432_s0, 384, %s22_s9, [#allocation3], %s1348_s11, %s1348_s11, %s1349_s12  }
  0x1b   :  { %s1350_s15 = smov [#allocation7]   ;;  %s1351_s17 = smov [#allocation8]  }
  0x1c   :  { %s47_s16 = sshll.u32 %s1350_s15, 4  ;;  %s61_s1 = sshll.u32 %s1351_s17, 4  ;;  %s48_s16 = int_to_ptr.vmem [resolvable:$true] %s47_s16  ;;  %s62_s1 = int_to_ptr.vmem [resolvable:$true] %s61_s1 }
  0x1d   :  { %s1284_s18 = scalar_lea.vmem %s48_s16, 4096  ;;  %p1289_p11 = scmp.lt.s32.totalorder %s48_s16, %s48_s16 }
  0x1e   :  { %p1285_p10 = scmp.ne.s32.totalorder %s48_s16, %s1284_s18  ;;  %p1290_p12 = scmp.lt.s32.totalorder %s1284_s18, %s1284_s18 }
  0x20   :  { %p1291_p13 = por %p1290_p12, %p1289_p11 }
  0x22   :  { %p1292_p0 = pnand %p1291_p13, %p1285_p10 }
  0x24   :  { %1295 = shalt.err (!%p1292_p0)
}
  0x25   :  { %53 = dma.hbm_to_vmem [thread:$0]  %s1435_s3, 4096, %s48_s16, [#allocation6], %s1345_s27, %s1345_s27, %s1346_s28  }
  0x26   :  { %s1304_s0 = scalar_lea.vmem %s62_s1, 2048  ;;  %p1309_p2 = scmp.lt.s32.totalorder %s62_s1, %s62_s1 }
  0x27   :  { %p1305_p1 = scmp.ne.s32.totalorder %s62_s1, %s1304_s0  ;;  %p1310_p3 = scmp.lt.s32.totalorder %s1304_s0, %s1304_s0 }
  0x29   :  { %p1311_p4 = por %p1310_p3, %p1309_p2 }
  0x2b   :  { %p1312_p5 = pnand %p1311_p4, %p1305_p1 }
  0x2d   :  { %1315 = shalt.err (!%p1312_p5)
}
  0x2e   :  { %s1352_s21 = smov 64   ;;  %s1353_s22 = smov 4  }
  0x2f   :  { %67 = dma.hbm_to_vmem [thread:$0]  %s1437_s5, 2048, %s62_s1, [#allocation9], %s1352_s21, %s1352_s21, %s1353_s22  }
  0x30   :  { %1336 = dma.done.wait [#allocation3], 384  }
  0x31   :  { %1337 = vsyncadd [#allocation3], 4294966912 }
  0x32   :  { %1338 = dma.done.wait [#allocation6], 10240  }
  0x33   :  { %1339 = vsyncadd [#allocation6], 4294957056 }
  0x34   :  { %1340 = dma.done.wait [#allocation9], 2048  }
  0x35   :  { %1341 = vsyncadd [#allocation9], 4294965248  ;;  %v1354_v0 = vmov 0   ;;  %v1096_v1 = vld [vmem:[#allocation5 + $0x74] ss:$8 sps:$4 sm:$0xff]   ;;  %s1355_s27 = smov [#allocation10]  }
  0x36   :  { %478 = vmatprep.mubr.bf16.mxu1 %v1354_v0  ;;  %v1098_v2 = vld [vmem:[#allocation5 + $0x70] ss:$8 sps:$4 sm:$0xff]   ;;  %403 = vmatprep.subr.bf16.mxu0 %v1096_v1  ;;  %v1099_v3 = vld [vmem:[#allocation5 + $0x64] ss:$8 sps:$4 sm:$0xff]   ;;  %v1101_v4 = vld [vmem:[#allocation5 + $0x60] ss:$8 sps:$4 sm:$0xff]  }
  0x37   :  { %404 = vmatpush1.bf16.msra.mxu0 %v1098_v2  ;;  %v1102_v5 = vld [vmem:[#allocation5 + $0x54] ss:$8 sps:$4 sm:$0xff]   ;;  %v1104_v6 = vld [vmem:[#allocation5 + $0x50] ss:$8 sps:$4 sm:$0xff]   ;;  %v1105_v7 = vld [vmem:[#allocation5 + $0x44] ss:$8 sps:$4 sm:$0xff]  }
  0x38   :  { %405 = vmatprep.subr.bf16.mxu0 %v1099_v3  ;;  %v1107_v8 = vld [vmem:[#allocation5 + $0x40] ss:$8 sps:$4 sm:$0xff]   ;;  %v1119_v9 = vld [vmem:[#allocation5 + $0x174] ss:$8 sps:$4 sm:$0xff]   ;;  %v1122_v10 = vld [vmem:[#allocation5 + $0x170] ss:$8 sps:$4 sm:$0xff]  }
  0x39   :  { %v1108_v11 = vld [vmem:[#allocation5 + $0x34] ss:$8 sps:$4 sm:$0xff]   ;;  %446 = vmatprep.subr.bf16.mxu1 %v1119_v9  ;;  %v1125_v12 = vld [vmem:[#allocation5 + $0x164] ss:$8 sps:$4 sm:$0xff]   ;;  %v1128_v13 = vld [vmem:[#allocation5 + $0x160] ss:$8 sps:$4 sm:$0xff]  }
  0x3a   :  { %447 = vmatpush1.bf16.msra.mxu1 %v1122_v10  ;;  %v1110_v14 = vld [vmem:[#allocation5 + $0x30] ss:$8 sps:$4 sm:$0xff]   ;;  %v1111_v15 = vld [vmem:[#allocation5 + $0x24] ss:$8 sps:$4 sm:$0xff]   ;;  %v1131_v16 = vld [vmem:[#allocation5 + $0x154] ss:$8 sps:$4 sm:$0xff]  }
  0x3b   :  { %406 = vmatpush1.bf16.msra.mxu0 %v1101_v4  ;;  %448 = vmatprep.subr.bf16.mxu1 %v1125_v12  ;;  %v1134_v17 = vld [vmem:[#allocation5 + $0x150] ss:$8 sps:$4 sm:$0xff]   ;;  %v1113_v18 = vld [vmem:[#allocation5 + $0x20] ss:$8 sps:$4 sm:$0xff]   ;;  %v1137_v19 = vld [vmem:[#allocation5 + $0x144] ss:$8 sps:$4 sm:$0xff]  }
  0x3c   :  { %407 = vmatprep.subr.bf16.mxu0 %v1102_v5  ;;  %v1114_v20 = vld [vmem:[#allocation5 + $0x14] ss:$8 sps:$4 sm:$0xff]   ;;  %v1116_v21 = vld [vmem:[#allocation5 + $0x10] ss:$8 sps:$4 sm:$0xff]   ;;  %v1140_v22 = vld [vmem:[#allocation5 + $0x140] ss:$8 sps:$4 sm:$0xff]  }
  0x3d   :  { %v1143_v23 = vld [vmem:[#allocation5 + $0x134] ss:$8 sps:$4 sm:$0xff]   ;;  %v1117_v24 = vld [vmem:[#allocation5 + $0x4] ss:$8 sps:$4 sm:$0xff]   ;;  %v1146_v25 = vld [vmem:[#allocation5 + $0x130] ss:$8 sps:$4 sm:$0xff]  }
  0x3e   :  { %449 = vmatpush1.bf16.msra.mxu1 %v1128_v13  ;;  %v1121_v26 = vld [vmem:[#allocation5] ss:$8 sps:$4 sm:$0xff]   ;;  %v1149_v27 = vld [vmem:[#allocation5 + $0x124] ss:$8 sps:$4 sm:$0xff]   ;;  %v1123_v28 = vld [vmem:[#allocation5 + $0xf4] ss:$8 sps:$4 sm:$0xff]  }
  0x3f   :  { %408 = vmatpush1.bf16.msra.mxu0 %v1104_v6  ;;  %450 = vmatprep.subr.bf16.mxu1 %v1131_v16  ;;  %v1127_v29 = vld [vmem:[#allocation5 + $0xf0] ss:$8 sps:$4 sm:$0xff]   ;;  %v1152_v30 = vld [vmem:[#allocation5 + $0x120] ss:$8 sps:$4 sm:$0xff]   ;;  %v1155_v31 = vld [vmem:[#allocation5 + $0x114] ss:$8 sps:$4 sm:$0xff]  }
  0x40   :  { %409 = vmatprep.subr.bf16.mxu0 %v1105_v7  ;;  %v1129_v32 = vld [vmem:[#allocation5 + $0xe4] ss:$8 sps:$4 sm:$0xff]   ;;  %v1158_v33 = vld [vmem:[#allocation5 + $0x110] ss:$8 sps:$4 sm:$0xff]   ;;  %v1133_v35 = vld [vmem:[#allocation5 + $0xe0] ss:$8 sps:$4 sm:$0xff]  }
  0x41   :  { %v1171_v34 = vld [vmem:[#allocation2 + $0x4] ss:$12 sps:$4 sm:$0xff]   ;;  %v1135_v37 = vld [vmem:[#allocation5 + $0xd4] ss:$8 sps:$4 sm:$0xff]   ;;  %v1164_v38 = vld [vmem:[#allocation5 + $0x100] ss:$8 sps:$4 sm:$0xff]  }
  0x42   :  { %451 = vmatpush1.bf16.msra.mxu1 %v1134_v17  ;;  %v1161_v36 = vld [vmem:[#allocation5 + $0x104] ss:$8 sps:$4 sm:$0xff]   ;;  %435 = vmatprep.mubr.bf16.mxu0 %v1171_v34  ;;  %v1139_v39 = vld [vmem:[#allocation5 + $0xd0] ss:$8 sps:$4 sm:$0xff]   ;;  %v1174_v40 = vld [vmem:[#allocation7 + $0x74] ss:$8 sps:$4 sm:$0xff]  }
  0x43   :  { %410 = vmatpush1.bf16.msra.mxu0 %v1107_v8  ;;  %452 = vmatprep.subr.bf16.mxu1 %v1137_v19  ;;  %v1141_v41 = vld [vmem:[#allocation5 + $0xc4] ss:$8 sps:$4 sm:$0xff]   ;;  %v1167_v42 = vld [vmem:[#allocation2 + $0x8] ss:$12 sps:$4 sm:$0xff]   ;;  %v1145_v44 = vld [vmem:[#allocation5 + $0xc0] ss:$8 sps:$4 sm:$0xff]  }
  0x44   :  { %411 = vmatprep.subr.bf16.mxu0 %v1108_v11  ;;  %v1172_v43 = vld [vmem:[#allocation7 + $0x70] ss:$8 sps:$4 sm:$0xff]   ;;  %v1177_v45 = vld [vmem:[#allocation7 + $0x64] ss:$8 sps:$4 sm:$0xff]   ;;  %v1147_v46 = vld [vmem:[#allocation5 + $0xb4] ss:$8 sps:$4 sm:$0xff]  }
  0x45   :  { %v1175_v47 = vld [vmem:[#allocation7 + $0x60] ss:$8 sps:$4 sm:$0xff]   ;;  %v1151_v48 = vld [vmem:[#allocation5 + $0xb0] ss:$8 sps:$4 sm:$0xff]   ;;  %v1180_v49 = vld [vmem:[#allocation7 + $0x54] ss:$8 sps:$4 sm:$0xff]  }
  0x46   :  { %453 = vmatpush1.bf16.msra.mxu1 %v1140_v22  ;;  %v1153_v50 = vld [vmem:[#allocation5 + $0xa4] ss:$8 sps:$4 sm:$0xff]   ;;  %v1178_v51 = vld [vmem:[#allocation7 + $0x50] ss:$8 sps:$4 sm:$0xff]   ;;  %v1157_v52 = vld [vmem:[#allocation5 + $0xa0] ss:$8 sps:$4 sm:$0xff]  }
  0x47   :  { %412 = vmatpush1.bf16.msra.mxu0 %v1110_v14  ;;  %454 = vmatprep.subr.bf16.mxu1 %v1143_v23  ;;  %v1183_v53 = vld [vmem:[#allocation7 + $0x44] ss:$8 sps:$4 sm:$0xff]   ;;  %v1159_v54 = vld [vmem:[#allocation5 + $0x94] ss:$8 sps:$4 sm:$0xff]   ;;  %v1181_v55 = vld [vmem:[#allocation7 + $0x40] ss:$8 sps:$4 sm:$0xff]  }
  0x48   :  { %413 = vmatprep.subr.bf16.mxu0 %v1111_v15  ;;  %v1163_v56 = vld [vmem:[#allocation5 + $0x90] ss:$8 sps:$4 sm:$0xff]   ;;  %v1186_v57 = vld [vmem:[#allocation7 + $0x34] ss:$8 sps:$4 sm:$0xff]   ;;  %v1165_v58 = vld [vmem:[#allocation5 + $0x84] ss:$8 sps:$4 sm:$0xff]  }
  0x49   :  { %v1184_v59 = vld [vmem:[#allocation7 + $0x30] ss:$8 sps:$4 sm:$0xff]   ;;  %v1168_v60 = vld [vmem:[#allocation5 + $0x80] ss:$8 sps:$4 sm:$0xff]   ;;  %v1189_v61 = vld [vmem:[#allocation7 + $0x24] ss:$8 sps:$4 sm:$0xff]  }
  0x4a   :  { %455 = vmatpush1.bf16.msra.mxu1 %v1146_v25  ;;  %v1169_v62 = vld [vmem:[#allocation2] ss:$12 sps:$4 sm:$0xff]   ;;  %v1190_v1 = vld [vmem:[#allocation7 + $0x10] ss:$8 sps:$4 sm:$0xff]   ;;  %v1195_v2 = vld [vmem:[#allocation7 + $0x4] ss:$8 sps:$4 sm:$0xff]  }
  0x4b   :  { %414 = vmatpush1.bf16.msra.mxu0 %v1113_v18  ;;  %456 = vmatprep.subr.bf16.mxu1 %v1149_v27  ;;  %v1187_v63 = vld [vmem:[#allocation7 + $0x20] ss:$8 sps:$4 sm:$0xff]   ;;  %v1192_v0 = vld [vmem:[#allocation7 + $0x14] ss:$8 sps:$4 sm:$0xff]   ;;  %v1196_v5 = vld [vmem:[#allocation7 + $0xf0] ss:$8 sps:$4 sm:$0xff]  }
  0x4c   :  { %415 = vmatprep.subr.bf16.mxu0 %v1114_v20  ;;  %v1193_v3 = vld [vmem:[#allocation7] ss:$8 sps:$4 sm:$0xff]   ;;  %v1198_v4 = vld [vmem:[#allocation7 + $0xf4] ss:$8 sps:$4 sm:$0xff]   ;;  %v1201_v6 = vld [vmem:[#allocation7 + $0xe4] ss:$8 sps:$4 sm:$0xff]  }
  0x4d   :  { %v1199_v7 = vld [vmem:[#allocation7 + $0xe0] ss:$8 sps:$4 sm:$0xff]   ;;  %v1204_v8 = vld [vmem:[#allocation7 + $0xd4] ss:$8 sps:$4 sm:$0xff]   ;;  %v1202_v9 = vld [vmem:[#allocation7 + $0xd0] ss:$8 sps:$4 sm:$0xff]  }
  0x4e   :  { %457 = vmatpush1.bf16.msra.mxu1 %v1152_v30  ;;  %v1205_v10 = vld [vmem:[#allocation7 + $0xc0] ss:$8 sps:$4 sm:$0xff]   ;;  %v1207_v11 = vld [vmem:[#allocation7 + $0xc4] ss:$8 sps:$4 sm:$0xff]   ;;  %v1210_v12 = vld [vmem:[#allocation7 + $0xb4] ss:$8 sps:$4 sm:$0xff]   ;;  %v137_v30 = vlaneseq }
  0x4f   :  { %416 = vmatpush1.bf16.msra.mxu0 %v1116_v21  ;;  %458 = vmatprep.subr.bf16.mxu1 %v1155_v31  ;;  %v1208_v13 = vld [vmem:[#allocation7 + $0xb0] ss:$8 sps:$4 sm:$0xff]   ;;  %v1213_v14 = vld [vmem:[#allocation7 + $0xa4] ss:$8 sps:$4 sm:$0xff]   ;;  %v1211_v15 = vld [vmem:[#allocation7 + $0xa0] ss:$8 sps:$4 sm:$0xff]  }
  0x50   :  { %417 = vmatprep.subr.bf16.mxu0 %v1117_v24  ;;  %v1216_v16 = vld [vmem:[#allocation7 + $0x94] ss:$8 sps:$4 sm:$0xff]   ;;  %v1214_v17 = vld [vmem:[#allocation7 + $0x90] ss:$8 sps:$4 sm:$0xff]   ;;  %v1219_v18 = vld [vmem:[#allocation7 + $0x84] ss:$8 sps:$4 sm:$0xff]  }
  0x51   :  { %v1217_v19 = vld [vmem:[#allocation7 + $0x80] ss:$8 sps:$4 sm:$0xff]   ;;  %v1220_v20 = vld [vmem:[#allocation8 + $0x78] sm:$0xff]   ;;  %v1222_v22 = vld [vmem:[#allocation8 + $0x70] sm:$0xff]   ;;  %v138_v31 = vshrl.u32 %v137_v30, 7  ;;  %s939_s28 = sshll.u32 %s1355_s27, 4  ;;  %s940_s28 = int_to_ptr.vmem [resolvable:$true] %s939_s28 }
  0x52   :  { %459 = vmatpush1.bf16.msra.mxu1 %v1158_v33  ;;  %v1221_v21 = vld [vmem:[#allocation8 + $0x38] sm:$0xff]   ;;  %v1223_v23 = vld [vmem:[#allocation8 + $0x30] sm:$0xff]   ;;  %v1224_v24 = vld [vmem:[#allocation8 + $0x68] sm:$0xff]   ;;  %s1316_s29 = scalar_lea.vmem %s940_s28, 128  ;;  %p1321_p7 = scmp.lt.s32.totalorder %s940_s28, %s940_s28 }
  0x53   :  { %418 = vmatpush1.bf16.msra.mxu0 %v1121_v26  ;;  %460 = vmatprep.subr.bf16.mxu1 %v1161_v36  ;;  %v1225_v25 = vld [vmem:[#allocation8 + $0x28] sm:$0xff]   ;;  %v1226_v26 = vld [vmem:[#allocation8 + $0x60] sm:$0xff]   ;;  %v139_v34 = vsub.s32 0, %v138_v31  ;;  %p1317_p6 = scmp.ne.s32.totalorder %s940_s28, %s1316_s29  ;;  %p1322_p8 = scmp.lt.s32.totalorder %s1316_s29, %s1316_s29 }
  0x54   :  { %419 = vmatprep.subr.bf16.mxu0 %v1123_v28  ;;  %v1227_v27 = vld [vmem:[#allocation8 + $0x20] sm:$0xff]   ;;  %v1228_v28 = vld [vmem:[#allocation8 + $0x58] sm:$0xff]  }
  0x55   :  { %p1323_p9 = por %p1322_p8, %p1321_p7 }
  0x56   :  { %461 = vmatpush1.bf16.msra.mxu1 %v1164_v38 }
  0x57   :  { %420 = vmatpush2.bf16.msra.mxu0 %v1127_v29  ;;  %699 = vmatprep.subr.bf16.mxu1 %v1174_v40  ;;  %v1229_v29 = vld [vmem:[#allocation8 + $0x18] sm:$0xff]   ;;  %p1324_p10 = pnand %p1323_p9, %p1317_p6 }
  0x58   :  { %421 = vmatprep.subr.bf16.mxu0 %v1129_v32  ;;  %v143_v32 = vsub.s32 1, %v138_v31 }
  0x59   :  { %479 = vmatmul.mubr.bf16.vlgmr.msra.gmra.mxu1 %v1167_v42 }
  0x5a   :  { %700 = vmatpush1.bf16.msra.mxu1 %v1172_v43 }
  0x5b   :  { %422 = vmatpush2.bf16.msra.mxu0 %v1133_v35  ;;  %701 = vmatprep.subr.bf16.mxu1 %v1177_v45  ;;  %v135_v35 = vld [vmem:[%s1434_s2] sm:$0x3] }
  0x5c   :  { %423 = vmatprep.subr.bf16.mxu0 %v1135_v37  ;;  %v144_v36 = vrot.slane %v135_v35, %v143_v32  ;;  %v140_v38 = vrot.slane %v135_v35, %v139_v34 }
  0x5e   :  { %702 = vmatpush1.bf16.msra.mxu1 %v1175_v47 }
  0x5f   :  { %424 = vmatpush2.bf16.msra.mxu0 %v1139_v39  ;;  %703 = vmatprep.subr.bf16.mxu1 %v1180_v49 }
  0x60   :  { %425 = vmatprep.subr.bf16.mxu0 %v1141_v41 }
  0x62   :  { %704 = vmatpush1.bf16.msra.mxu1 %v1178_v51 }
  0x63   :  { %426 = vmatpush2.bf16.msra.mxu0 %v1145_v44  ;;  %705 = vmatprep.subr.bf16.mxu1 %v1183_v53 }
  0x64   :  { %427 = vmatprep.subr.bf16.mxu0 %v1147_v46 }
  0x66   :  { %706 = vmatpush1.bf16.msra.mxu1 %v1181_v55 }
  0x67   :  { %428 = vmatpush2.bf16.msra.mxu0 %v1151_v48  ;;  %707 = vmatprep.subr.bf16.mxu1 %v1186_v57 }
  0x68   :  { %429 = vmatprep.subr.bf16.mxu0 %v1153_v50 }
  0x6a   :  { %708 = vmatpush1.bf16.msra.mxu1 %v1184_v59  ;;  %v1230_v59 = vld [vmem:[#allocation8 + $0x50] sm:$0xff]  }
  0x6b   :  { %430 = vmatpush2.bf16.msra.mxu0 %v1157_v52  ;;  %709 = vmatprep.subr.bf16.mxu1 %v1189_v61  ;;  %v1232_v61 = vld [vmem:[#allocation8 + $0x48] sm:$0xff]  }
  0x6c   :  { %431 = vmatprep.subr.bf16.mxu0 %v1159_v54 }
  0x6e   :  { %710 = vmatpush1.bf16.msra.mxu1 %v1187_v63  ;;  %v1234_v63 = vld [vmem:[#allocation8 + $0x40] sm:$0xff]  }
  0x6f   :  { %432 = vmatpush2.bf16.msra.mxu0 %v1163_v56  ;;  %711 = vmatprep.subr.bf16.mxu1 %v1192_v0  ;;  %v1235_v0 = vld [vmem:[#allocation8] sm:$0xff]  }
  0x70   :  { %433 = vmatprep.subr.bf16.mxu0 %v1165_v58 }
  0x72   :  { %712 = vmatpush1.bf16.msra.mxu1 %v1190_v1  ;;  %v527_v1 = vld [vmem:[%s1436_s4] sm:$0x3] }
  0x73   :  { %434 = vmatpush2.bf16.msra.mxu0 %v1168_v60  ;;  %713 = vmatprep.subr.bf16.mxu1 %v1195_v2  ;;  %v1231_v60 = vld [vmem:[#allocation8 + $0x10] sm:$0xff]  }
  0x74   :  { %1062 = vmatprep.subr.bf16.mxu0 %v1220_v20 }
  0x76   :  { %436 = vmatmul.mubr.bf16.vlgmr.msra.gmra.mxu0 %v1169_v62  ;;  %714 = vmatpush1.bf16.msra.mxu1 %v1193_v3  ;;  %v1233_v62 = vld [vmem:[#allocation8 + $0x8] sm:$0xff]   ;;  %v536_v3 = vrot.slane %v527_v1, %v143_v32 }
  0x77   :  { %715 = vmatprep.subr.bf16.mxu1 %v1198_v4  ;;  %1063 = vmatpush3.bf16.msra.mxu0 %v1221_v21  ;;  %v532_v4 = vrot.slane %v527_v1, %v139_v34 }
  0x78   :  { %1064 = vmatprep.subr.bf16.mxu0 %v1222_v22  ;;  %v1036_v22 = vld [vmem:[%s1438_s6] ss:$0 sm:$0xff] }
  0x7a   :  { %716 = vmatpush2.bf16.msra.mxu1 %v1196_v5 }
  0x7b   :  { %717 = vmatprep.subr.bf16.mxu1 %v1201_v6  ;;  %1065 = vmatpush3.bf16.msra.mxu0 %v1223_v23 }
  0x7c   :  { %1066 = vmatprep.subr.bf16.mxu0 %v1224_v24 }
  0x7e   :  { %718 = vmatpush2.bf16.msra.mxu1 %v1199_v7 }
  0x7f   :  { %719 = vmatprep.subr.bf16.mxu1 %v1204_v8  ;;  %1067 = vmatpush3.bf16.msra.mxu0 %v1225_v25 }
  0x80   :  { %1068 = vmatprep.subr.bf16.mxu0 %v1226_v26 }
  0x82   :  { %720 = vmatpush2.bf16.msra.mxu1 %v1202_v9 }
  0x83   :  { %721 = vmatprep.subr.bf16.mxu1 %v1207_v11  ;;  %1069 = vmatpush3.bf16.msra.mxu0 %v1227_v27 }
  0x84   :  { %1070 = vmatprep.subr.bf16.mxu0 %v1228_v28 }
  0x86   :  { %722 = vmatpush2.bf16.msra.mxu1 %v1205_v10 }
  0x87   :  { %723 = vmatprep.subr.bf16.mxu1 %v1210_v12  ;;  %1071 = vmatpush3.bf16.msra.mxu0 %v1229_v29 }
  0x88   :  { %1072 = vmatprep.subr.bf16.mxu0 %v1230_v59 }
  0x8a   :  { %724 = vmatpush2.bf16.msra.mxu1 %v1208_v13 }
  0x8b   :  { %725 = vmatprep.subr.bf16.mxu1 %v1213_v14  ;;  %1073 = vmatpush3.bf16.msra.mxu0 %v1231_v60 }
  0x8c   :  { %1074 = vmatprep.subr.bf16.mxu0 %v1232_v61 }
  0x8e   :  { %726 = vmatpush2.bf16.msra.mxu1 %v1211_v15 }
  0x8f   :  { %727 = vmatprep.subr.bf16.mxu1 %v1216_v16  ;;  %1075 = vmatpush3.bf16.msra.mxu0 %v1233_v62 }
  0x90   :  { %1076 = vmatprep.subr.bf16.mxu0 %v1234_v63 }
  0x92   :  { %728 = vmatpush2.bf16.msra.mxu1 %v1214_v17 }
  0x93   :  { %729 = vmatprep.subr.bf16.mxu1 %v1219_v18  ;;  %1077 = vmatpush3.bf16.msra.mxu0 %v1235_v0 }
  0x96   :  { %730 = vmatpush2.bf16.msra.mxu1 %v1217_v19 }
 0x119   :  { %v480_v33 = vpop.f32.mrf.mxu1 }
 0x11b   :  { %v482_v37 = vpop.f32.mrf.mxu1 }
 0x11d   :  { %v484_v43 = vpop.f32.mrf.mxu1 }
 0x11f   :  { %v486_v51 = vpop.f32.mrf.mxu1 }
 0x136   :  { %v437_v39 = vpop.f32.mrf.mxu0 }
 0x137   :  { %v438_v42 = vadd.f32 %v437_v39, %v140_v38 }
 0x138   :  { %v439_v40 = vpop.f32.mrf.mxu0 }
 0x139   :  { %v440_v41 = vadd.f32 %v439_v40, %v144_v36  ;;  %v481_v50 = vadd.f32 %v480_v33, %v438_v42 }
 0x13a   :  { %v441_v44 = vpop.f32.mrf.mxu0 }
 0x13b   :  { %v442_v45 = vadd.f32 %v441_v44, %v140_v38  ;;  %v483_v47 = vadd.f32 %v482_v37, %v440_v41  ;;  %v489_v56 = vmax.f32 %v481_v50, 0.0 }
 0x13c   :  { %v443_v46 = vpop.f32.mrf.mxu0 }
 0x13d   :  { %v485_v48 = vadd.f32 %v484_v43, %v442_v45  ;;  %v444_v49 = vadd.f32 %v443_v46, %v144_v36  ;;  %v490_v54 = vmax.f32 %v483_v47, 0.0 }
 0x13f   :  { %v487_v52 = vadd.f32 %v486_v51, %v444_v49  ;;  %v491_v53 = vmax.f32 %v485_v48, 0.0 }
 0x141   :  { %v492_v55 = vmax.f32 %v487_v52, 0.0  ;;  %v493_v58 = vpack.c.bf16 %v491_v53, %v489_v56 }
 0x143   :  { %v494_v57 = vpack.c.bf16 %v492_v55, %v490_v54 }
 0x145   :  { %731 = vmatprep.mubr.bf16.mxu1 %v494_v57 }
 0x146   :  { %732 = vmatmul.mubr.bf16.vlgmr.msra.gmra.mxu1 %v493_v58 }
 0x206   :  { %v733_v2 = vpop.f32.mrf.mxu1 }
 0x207   :  { %v734_v9 = vadd.f32 %v733_v2, %v532_v4 }
 0x208   :  { %v735_v5 = vpop.f32.mrf.mxu1 }
 0x209   :  { %v736_v7 = vadd.f32 %v735_v5, %v536_v3  ;;  %v742_v15 = vmax.f32 %v734_v9, 0.0 }
 0x20a   :  { %v737_v6 = vpop.f32.mrf.mxu1 }
 0x20b   :  { %v738_v8 = vadd.f32 %v737_v6, %v532_v4  ;;  %v743_v13 = vmax.f32 %v736_v7, 0.0 }
 0x20c   :  { %v739_v10 = vpop.f32.mrf.mxu1 }
 0x20d   :  { %v740_v11 = vadd.f32 %v739_v10, %v536_v3  ;;  %v744_v12 = vmax.f32 %v738_v8, 0.0 }
 0x20f   :  { %v745_v14 = vmax.f32 %v740_v11, 0.0  ;;  %v746_v17 = vpack.c.bf16 %v744_v12, %v742_v15 }
 0x211   :  { %v747_v16 = vpack.c.bf16 %v745_v14, %v743_v13 }
 0x213   :  { %915 = vmatprep.mubr.bf16.mxu0 %v747_v16 }
 0x214   :  { %916 = vmatmul.mubr.bf16.vlgmr.msra.gmra.mxu0 %v746_v17 }
 0x2d4   :  { %v1078_v18 = vpop.f32.mrf.mxu0 }
 0x2d6   :  { %v1079_v19 = vpop.f32.mrf.mxu0 }
 0x2d7   :  { %v1080_v21 = vadd.f32 %v1079_v19, %v1078_v18 }
 0x2d8   :  { %v1081_v20 = vpop.f32.mrf.mxu0 }
 0x2d9   :  { %v918_v25 = vadd.f32 %v1080_v21, %v1036_v22 }
 0x2da   :  { %v1082_v23 = vpop.f32.mrf.mxu0 }
 0x2db   :  { %v1083_v24 = vadd.f32 %v1082_v23, %v1081_v20 }
 0x2dd   :  { %v921_v26 = vadd.f32 %v1083_v24, %v1036_v22 }
 0x2df   :  { %v1060_v27 = vpack.c.bf16 %v921_v26, %v918_v25 }
 0x2e1   :  { %1061 = vst [vmem:[#allocation10] sm:$0xff] %v1060_v27  }
 0x2e2   :  { %1327 = shalt.err (!%p1324_p10)
}
 0x2e3   :  { %945 = dma.vmem_to_hbm [thread:$0]  %s940_s28, 128, %s1439_s7, [#allocation4], %s1352_s21, %s1352_s21, %s1353_s22  }
 0x2e4   :  { %1342 = dma.done.wait [#allocation4], 128  }
 0x2e5   :  { %1343 = vsyncadd [#allocation4], 4294967168 }
 0x2e6   :  { %949 = vsyncpa [#allocation3], 1 }
 0x2e7   :  { %950 = vsyncpa [#allocation6], 1 }
 0x2e8   :  { %951 = vsyncpa [#allocation9], 1 }
 0x2e9   :  { %952 = vsyncpa [#allocation4], 1 }

</bundles_post_ra>
